<compile_context>
chip_gen: v6e
topology: v6e:2x2x1
jax: 0.10.0
libtpu: 0.0.40
codegen_flags: <defaults>
</compile_context>

<pallas_src>
import functools

import jax
import jax.numpy as jnp
from jax.experimental import pallas as pl
from jax.experimental.pallas import tpu as pltpu


_IGNORE_INDEX = -100  # torch.nn.CrossEntropyLoss default


def _round_up(x, m):
    return (x + m - 1) // m * m


def _chip_profile():
    """Per-generation budgets: #TensorCores, VMEM ceiling, per-buffer tile cap."""
    kind = ""
    try:
        d = jax.devices()[0]
        if d.platform == "tpu":
            kind = (getattr(d, "device_kind", "") or "").lower()
    except Exception:
        kind = ""
    if "v7" in kind or "7x" in kind:            # 64 MiB VMEM / TC, 2 TCs
        return dict(cores=2, vmem_cap=48 << 20, buf_cap=6 << 20)
    if "v6" in kind or "v5e" in kind or "lite" in kind:   # 128 MiB VMEM, 1 TC
        return dict(cores=1, vmem_cap=100 << 20, buf_cap=10 << 20)
    if "v5" in kind or "v4" in kind:            # v5p / v4 megacore, 128 MiB
        return dict(cores=2, vmem_cap=100 << 20, buf_cap=10 << 20)
    if "v3" in kind or "v2" in kind:            # small VMEM generations
        return dict(cores=1, vmem_cap=12 << 20, buf_cap=1 << 20)
    # Unknown backend (e.g. interpret mode): conservative v7x-style budget.
    return dict(cores=1, vmem_cap=48 << 20, buf_cap=6 << 20)


def _gvi_nll_kernel(logits_ref, labels_ref, sum_ref, cnt_ref, sum_sc, cnt_sc,
                    *, n_rows, ignore_index):
    # logits_ref: (TM, C) native dtype, VMEM
    # labels_ref: (TM, 1) int32, VMEM
    # sum_ref/cnt_ref: (8, 128) f32 per-chunk output blocks (written once)
    # sum_sc/cnt_sc:   (TM, 1) f32 VMEM scratch accumulators
    c = pl.program_id(0)            # chunk (parallel axis)
    t = pl.program_id(1)            # tile within chunk (reduction axis)
    t_steps = pl.num_programs(1)

    @pl.when(t == 0)
    def _init():
        sum_sc[...] = jnp.zeros_like(sum_sc)
        cnt_sc[...] = jnp.zeros_like(cnt_sc)

    logits = logits_ref[...].astype(jnp.float32)        # widen inside the kernel
    labels = labels_ref[...]                            # (TM, 1) int32
    tm, n_cls = logits.shape

    # numerically-stable per-row log-sum-exp; row_max cancels in nll below
    row_max = jnp.max(logits, axis=-1, keepdims=True)            # (TM, 1)
    shifted = logits - row_max                                    # (TM, C)
    sum_exp = jnp.sum(jnp.exp(shifted), axis=-1, keepdims=True)   # (TM, 1)

    # gather true-class logit with a broadcast compare — no (TM, C) iota temp
    col_ids = jax.lax.broadcasted_iota(jnp.int32, (1, n_cls), 1)  # (1, C)
    true_shifted = jnp.sum(jnp.where(col_ids == labels, shifted, 0.0),
                           axis=-1, keepdims=True)                # (TM, 1)

    nll = jnp.log(sum_exp) - true_shifted                         # (TM, 1)

    # mask padded rows of edge / re-read tiles and ignore_index labels
    rows = (c * t_steps + t) * tm + jax.lax.broadcasted_iota(jnp.int32, (tm, 1), 0)
    valid = (rows < n_rows) & (labels != ignore_index)

    sum_sc[...] += jnp.where(valid, nll, 0.0)   # mask BEFORE any summation
    cnt_sc[...] += jnp.where(valid, 1.0, 0.0)

    @pl.when(t == t_steps - 1)
    def _finalize():
        # collapse to a scalar once per chunk; write a lane-dense block
        sum_ref[...] = jnp.full(sum_ref.shape, jnp.sum(sum_sc[...]), jnp.float32)
        cnt_ref[...] = jnp.full(cnt_ref.shape, jnp.sum(cnt_sc[...]), jnp.float32)


def gaussian_vi_loss(logits, y, kl, beta, *, block_rows=None, num_chunks=None,
                     logits_buffers=None, ignore_index=_IGNORE_INDEX):
    """JAX wrapper mirroring GaussianVariationalInference.forward."""
    n, c = logits.shape
    itemsize = jnp.dtype(logits.dtype).itemsize
    labels = y.reshape(n, 1).astype(jnp.int32)

    prof = _chip_profile()

    # --- tile rows: biggest native-dtype (TM, C) tile under the per-buffer cap,
    # capped at 2048 rows (keeps the lane-padded label block / scratch small).
    if block_rows is None:
        tm = (prof["buf_cap"] // max(c * itemsize, 1)) // 8 * 8
        tm = max(8, min(2048, tm))
        block_rows = min(tm, _round_up(n, 8))
    tm = max(8, _round_up(int(block_rows), 8))

    n_tiles = pl.cdiv(n, tm)
    if num_chunks is None:
        num_chunks = prof["cores"]          # parallel chunks only pay on 2-TC chips
    nc = max(1, min(int(num_chunks), n_tiles))
    t_steps = pl.cdiv(n_tiles, nc)

    def tile_map(ci, ti):
        # ragged last chunk: clamp to a valid tile; its rows are masked in-kernel
        return (jnp.minimum(ci * t_steps + ti, n_tiles - 1), 0)

    kernel = functools.partial(_gvi_nll_kernel, n_rows=n, ignore_index=ignore_index)

    # --- honest VMEM budget: buffered native logits tiles + lane-padded label
    # blocks + in-kernel f32 temporaries (cast / shifted / exp-where) + scratch.
    n_bufs = 2 if logits_buffers is None else max(2, int(logits_buffers))
    native_tile = tm * c * itemsize
    f32_tile = tm * c * 4
    narrow_tile = tm * 512                   # (TM, 1) block padded to 128 lanes
    vmem_needed = (n_bufs * native_tile                 # pipelined logits tiles
                   + 2 * narrow_tile                    # double-buffered labels
                   + 3 * f32_tile                       # elementwise temporaries
                   + 2 * narrow_tile                    # scratch accumulators
                   + 4 * 8 * 128 * 4                    # output blocks
                   + (2 << 20))                         # headroom
    vmem_limit = int(min(max(vmem_needed, 16 << 20), prof["vmem_cap"]))

    cost = pl.CostEstimate(
        flops=int(5 * n * c),
        transcendentals=int(n * c + n),                 # exp per element + log per row
        bytes_accessed=int(n * c * itemsize + n * 4 + 2 * nc * 8 * 128 * 4),
    )

    logits_spec_kwargs = {}
    if logits_buffers is not None and int(logits_buffers) > 2:
        # deeper pipelining on the streaming input (v7x, if the budget allows)
        logits_spec_kwargs["pipeline_mode"] = pl.Buffered(int(logits_buffers))

    sum_parts, cnt_parts = pl.pallas_call(
        kernel,
        out_shape=(
            jax.ShapeDtypeStruct((nc * 8, 128), jnp.float32),   # per-chunk NLL sums
            jax.ShapeDtypeStruct((nc * 8, 128), jnp.float32),   # per-chunk valid counts
        ),
        grid_spec=pltpu.PrefetchScalarGridSpec(
            num_scalar_prefetch=0,
            grid=(nc, t_steps),
            in_specs=[
                pl.BlockSpec((tm, c), tile_map, **logits_spec_kwargs),  # logits, native dtype
                pl.BlockSpec((tm, 1), tile_map),                        # labels
            ],
            out_specs=(
                pl.BlockSpec((8, 128), lambda ci, ti: (ci, 0)),
                pl.BlockSpec((8, 128), lambda ci, ti: (ci, 0)),
            ),
            scratch_shapes=[
                pltpu.VMEM((tm, 1), jnp.float32),   # per-row NLL sum accumulator
                pltpu.VMEM((tm, 1), jnp.float32),   # per-row valid-count accumulator
            ],
        ),
        compiler_params=pltpu.CompilerParams(
            dimension_semantics=("parallel", "arbitrary"),
            vmem_limit_bytes=vmem_limit,
        ),
        cost_estimate=cost,
    )(logits, labels)

    # every lane of a chunk's block carries the same scalar; pick [0, 0]
    s = jnp.sum(sum_parts.reshape(nc, 8, 128)[:, 0, 0])
    k = jnp.sum(cnt_parts.reshape(nc, 8, 128)[:, 0, 0])
    # NOTE: k == 0 (all rows ignored) yields NaN, matching torch's mean reduction.
    ce = s / k
    return ce + jnp.asarray(beta, jnp.float32) * jnp.asarray(kl, jnp.float32)


def _reference(logits, y, kl, beta):
    # pure-JAX reference identical to torch CrossEntropyLoss(mean) + beta*kl
    logp = jax.nn.log_softmax(logits.astype(jnp.float32), axis=-1)
    nll = -jnp.take_along_axis(logp, y[:, None].astype(jnp.int32), axis=-1)[:, 0]
    return jnp.mean(nll) + beta * kl


if __name__ == "__main__":
    key = jax.random.PRNGKey(0)
    k1, k2, k3 = jax.random.split(key, 3)

    N, C = 30, 32                      # batch=30 (not a tile multiple), classes=32
    logits = jax.random.normal(k1, (N, C), dtype=jnp.float32)
    y = jax.random.randint(k2, (N,), 0, C, dtype=jnp.int32)
    kl = jnp.abs(jax.random.normal(k3, (), dtype=jnp.float32)) * 10.0
    beta = jnp.float32(0.1)

    ref = _reference(logits, y, kl, beta)

    # multi-tile, two-chunk (megacore-style) path: grid (2, 2), ragged last tile masked
    loss_tiled = jax.block_until_ready(
        gaussian_vi_loss(logits, y, kl, beta, block_rows=8, num_chunks=2))
    assert jnp.allclose(loss_tiled, ref, rtol=1e-5, atol=1e-5), (loss_tiled, ref)

    # auto path: tile rows / chunk count / VMEM limit from the per-generation budget
    loss_auto = jax.block_until_ready(gaussian_vi_loss(logits, y, kl, beta))
    assert jnp.allclose(loss_auto, ref, rtol=1e-5, atol=1e-5), (loss_auto, ref)

    # bf16 logits stream into the kernel natively and are widened to f32 inside
    logits_bf16 = logits.astype(jnp.bfloat16)
    ref_bf16 = _reference(logits_bf16, y, kl, beta)
    loss_bf16 = jax.block_until_ready(
        gaussian_vi_loss(logits_bf16, y, kl, beta, block_rows=8, num_chunks=2))
    assert jnp.allclose(loss_bf16, ref_bf16, rtol=1e-3, atol=1e-3), (loss_bf16, ref_bf16)

    print("KERNEL_OK")
</pallas_src>

<mosaic_0001>
module attributes {stable_mosaic.version = 11 : i64} {
  func.func @_gvi_nll_kernel(%arg0: i32, %arg1: i32, %arg2: memref<8x32xf32, #tpu.memory_space<vmem>>, %arg3: memref<8x1xi32, #tpu.memory_space<vmem>>, %arg4: memref<8x128xf32, #tpu.memory_space<vmem>>, %arg5: memref<8x128xf32, #tpu.memory_space<vmem>>, %arg6: memref<8x1xf32, #tpu.memory_space<vmem>>, %arg7: memref<8x1xf32, #tpu.memory_space<vmem>>) attributes {dimension_semantics = [#tpu.dimension_semantics<parallel>, #tpu.dimension_semantics<arbitrary>], iteration_bounds = array<i64: 2, 2>, scalar_prefetch = 0 : i64, scratch_operands = 2 : i64, tpu.core_type = #tpu.core_type<tc>, window_params = [{transform_indices = @transform_0, window_bounds = array<i64: 8, 32>}, {transform_indices = @transform_1, window_bounds = array<i64: 8, 1>}, {transform_indices = @transform_2, window_bounds = array<i64: 8, 128>}, {transform_indices = @transform_3, window_bounds = array<i64: 8, 128>}]} {
    %c0_i32 = arith.constant 0 : i32
    %0 = arith.cmpi eq, %arg1, %c0_i32 : i32
    %1 = arith.extui %0 : i1 to i32
    %c0_i32_0 = arith.constant 0 : i32
    %2 = arith.cmpi ne, %1, %c0_i32_0 : i32
    scf.if %2 {
      %cst_19 = arith.constant 0.000000e+00 : f32
      %47 = vector.broadcast %cst_19 : f32 to vector<8x1xf32>
      %c0_20 = arith.constant 0 : index
      %c0_21 = arith.constant 0 : index
      %48 = vector.load %arg6[%c0_20, %c0_21] : memref<8x1xf32, #tpu.memory_space<vmem>>, vector<8x1xf32>
      tpu.vector_store %arg6[%c0_20, %c0_21], %47 {strides = array<i32>} : memref<8x1xf32, #tpu.memory_space<vmem>>, vector<8x1xf32>,
      %cst_22 = arith.constant 0.000000e+00 : f32
      %49 = vector.broadcast %cst_22 : f32 to vector<8x1xf32>
      %c0_23 = arith.constant 0 : index
      %c0_24 = arith.constant 0 : index
      %50 = vector.load %arg7[%c0_23, %c0_24] : memref<8x1xf32, #tpu.memory_space<vmem>>, vector<8x1xf32>
      tpu.vector_store %arg7[%c0_23, %c0_24], %49 {strides = array<i32>} : memref<8x1xf32, #tpu.memory_space<vmem>>, vector<8x1xf32>,
    } else {
    }
    %c0 = arith.constant 0 : index
    %c0_1 = arith.constant 0 : index
    %3 = vector.load %arg2[%c0, %c0_1] : memref<8x32xf32, #tpu.memory_space<vmem>>, vector<8x32xf32>
    %c0_2 = arith.constant 0 : index
    %c0_3 = arith.constant 0 : index
    %4 = vector.load %arg3[%c0_2, %c0_3] : memref<8x1xi32, #tpu.memory_space<vmem>>, vector<8x1xi32>
    %cst = arith.constant dense<0xFF800000> : vector<8xf32>
    %5 = vector.multi_reduction <maximumf>, %3, %cst [1] : vector<8x32xf32> to vector<8xf32>
    %6 = vector.shape_cast %5 : vector<8xf32> to vector<8x1xf32>
    %7 = vector.broadcast %6 : vector<8x1xf32> to vector<8x32xf32>
    %8 = arith.subf %3, %7 : vector<8x32xf32>
    %9 = math.exp %8 : vector<8x32xf32>
    %cst_4 = arith.constant dense<0.000000e+00> : vector<8xf32>
    %10 = vector.multi_reduction <add>, %9, %cst_4 [1] : vector<8x32xf32> to vector<8xf32>
    %11 = vector.shape_cast %10 : vector<8xf32> to vector<8x1xf32>
    %12 = tpu.iota {dimensions = array<i32: 1>} : vector<1x32xi32>
    %13 = vector.broadcast %12 : vector<1x32xi32> to vector<8x32xi32>
    %14 = vector.broadcast %4 : vector<8x1xi32> to vector<8x32xi32>
    %15 = arith.cmpi eq, %13, %14 : vector<8x32xi32>
    %cst_5 = arith.constant 0.000000e+00 : f32
    %16 = vector.broadcast %cst_5 : f32 to vector<8x32xf32>
    %17 = arith.select %15, %8, %16 : vector<8x32xi1>, vector<8x32xf32>
    %cst_6 = arith.constant dense<0.000000e+00> : vector<8xf32>
    %18 = vector.multi_reduction <add>, %17, %cst_6 [1] : vector<8x32xf32> to vector<8xf32>
    %19 = vector.shape_cast %18 : vector<8xf32> to vector<8x1xf32>
    %20 = math.log %11 : vector<8x1xf32>
    %21 = arith.subf %20, %19 : vector<8x1xf32>
    %c2_i32 = arith.constant 2 : i32
    %22 = arith.muli %arg0, %c2_i32 : i32
    %23 = arith.addi %22, %arg1 : i32
    %c8_i32 = arith.constant 8 : i32
    %24 = arith.muli %23, %c8_i32 : i32
    %25 = tpu.iota {dimensions = array<i32: 0>} : vector<8x1xi32>
    %26 = vector.broadcast %24 : i32 to vector<8x1xi32>
    %27 = arith.addi %26, %25 : vector<8x1xi32>
    %c30_i32 = arith.constant 30 : i32
    %28 = vector.broadcast %c30_i32 : i32 to vector<8x1xi32>
    %29 = arith.cmpi slt, %27, %28 : vector<8x1xi32>
    %c-100_i32 = arith.constant -100 : i32
    %30 = vector.broadcast %c-100_i32 : i32 to vector<8x1xi32>
    %31 = arith.cmpi ne, %4, %30 : vector<8x1xi32>
    %32 = arith.andi %29, %31 : vector<8x1xi1>
    %c0_7 = arith.constant 0 : index
    %c0_8 = arith.constant 0 : index
    %33 = vector.load %arg6[%c0_7, %c0_8] : memref<8x1xf32, #tpu.memory_space<vmem>>, vector<8x1xf32>
    %cst_9 = arith.constant 0.000000e+00 : f32
    %34 = vector.broadcast %cst_9 : f32 to vector<8x1xf32>
    %35 = arith.select %32, %21, %34 : vector<8x1xi1>, vector<8x1xf32>
    %36 = arith.addf %33, %35 : vector<8x1xf32>
    %c0_10 = arith.constant 0 : index
    %c0_11 = arith.constant 0 : index
    %37 = vector.load %arg6[%c0_10, %c0_11] : memref<8x1xf32, #tpu.memory_space<vmem>>, vector<8x1xf32>
    tpu.vector_store %arg6[%c0_10, %c0_11], %36 {strides = array<i32>} : memref<8x1xf32, #tpu.memory_space<vmem>>, vector<8x1xf32>,
    %c0_12 = arith.constant 0 : index
    %c0_13 = arith.constant 0 : index
    %38 = vector.load %arg7[%c0_12, %c0_13] : memref<8x1xf32, #tpu.memory_space<vmem>>, vector<8x1xf32>
    %cst_14 = arith.constant 1.000000e+00 : f32
    %cst_15 = arith.constant 0.000000e+00 : f32
    %39 = vector.broadcast %cst_14 : f32 to vector<8x1xf32>
    %40 = vector.broadcast %cst_15 : f32 to vector<8x1xf32>
    %41 = arith.select %32, %39, %40 : vector<8x1xi1>, vector<8x1xf32>
    %42 = arith.addf %38, %41 : vector<8x1xf32>
    %c0_16 = arith.constant 0 : index
    %c0_17 = arith.constant 0 : index
    %43 = vector.load %arg7[%c0_16, %c0_17] : memref<8x1xf32, #tpu.memory_space<vmem>>, vector<8x1xf32>
    tpu.vector_store %arg7[%c0_16, %c0_17], %42 {strides = array<i32>} : memref<8x1xf32, #tpu.memory_space<vmem>>, vector<8x1xf32>,
    %c1_i32 = arith.constant 1 : i32
    %44 = arith.cmpi eq, %arg1, %c1_i32 : i32
    %45 = arith.extui %44 : i1 to i32
    %c0_i32_18 = arith.constant 0 : i32
    %46 = arith.cmpi ne, %45, %c0_i32_18 : i32
    scf.if %46 {
      %c0_19 = arith.constant 0 : index
      %c0_20 = arith.constant 0 : index
      %47 = vector.load %arg6[%c0_19, %c0_20] : memref<8x1xf32, #tpu.memory_space<vmem>>, vector<8x1xf32>
      %48 = vector.shape_cast %47 : vector<8x1xf32> to vector<1x8x1xf32>
      %cst_21 = arith.constant dense<0.000000e+00> : vector<1xf32>
      %49 = vector.multi_reduction <add>, %48, %cst_21 [1, 2] : vector<1x8x1xf32> to vector<1xf32>
      %50 = vector.shape_cast %49 : vector<1xf32> to vector<1x1x1xf32>
      %51 = vector.extract %50[0, 0, 0] : f32 from vector<1x1x1xf32>
      %52 = vector.broadcast %51 : f32 to vector<8x128xf32>
      %c0_22 = arith.constant 0 : index
      %c0_23 = arith.constant 0 : index
      %53 = vector.load %arg4[%c0_22, %c0_23] : memref<8x128xf32, #tpu.memory_space<vmem>>, vector<8x128xf32>
      tpu.vector_store %arg4[%c0_22, %c0_23], %52 {strides = array<i32>} : memref<8x128xf32, #tpu.memory_space<vmem>>, vector<8x128xf32>,
      %c0_24 = arith.constant 0 : index
      %c0_25 = arith.constant 0 : index
      %54 = vector.load %arg7[%c0_24, %c0_25] : memref<8x1xf32, #tpu.memory_space<vmem>>, vector<8x1xf32>
      %55 = vector.shape_cast %54 : vector<8x1xf32> to vector<1x8x1xf32>
      %cst_26 = arith.constant dense<0.000000e+00> : vector<1xf32>
      %56 = vector.multi_reduction <add>, %55, %cst_26 [1, 2] : vector<1x8x1xf32> to vector<1xf32>
      %57 = vector.shape_cast %56 : vector<1xf32> to vector<1x1x1xf32>
      %58 = vector.extract %57[0, 0, 0] : f32 from vector<1x1x1xf32>
      %59 = vector.broadcast %58 : f32 to vector<8x128xf32>
      %c0_27 = arith.constant 0 : index
      %c0_28 = arith.constant 0 : index
      %60 = vector.load %arg5[%c0_27, %c0_28] : memref<8x128xf32, #tpu.memory_space<vmem>>, vector<8x128xf32>
      tpu.vector_store %arg5[%c0_27, %c0_28], %59 {strides = array<i32>} : memref<8x128xf32, #tpu.memory_space<vmem>>, vector<8x128xf32>,
    } else {
    }
    return
  }
  func.func @transform_0(%arg0: i32, %arg1: i32) -> (i32, i32) {
    %c2_i32 = arith.constant 2 : i32
    %0 = arith.muli %arg0, %c2_i32 : i32
    %1 = arith.addi %0, %arg1 : i32
    %c3_i32 = arith.constant 3 : i32
    %2 = arith.minsi %1, %c3_i32 : i32
    %c0_i32 = arith.constant 0 : i32
    %c0_i32_0 = arith.constant 0 : i32
    return %2, %c0_i32 : i32, i32
  }
  func.func @transform_1(%arg0: i32, %arg1: i32) -> (i32, i32) {
    %c2_i32 = arith.constant 2 : i32
    %0 = arith.muli %arg0, %c2_i32 : i32
    %1 = arith.addi %0, %arg1 : i32
    %c3_i32 = arith.constant 3 : i32
    %2 = arith.minsi %1, %c3_i32 : i32
    %c0_i32 = arith.constant 0 : i32
    %c0_i32_0 = arith.constant 0 : i32
    return %2, %c0_i32 : i32, i32
  }
  func.func @transform_2(%arg0: i32, %arg1: i32) -> (i32, i32) {
    %c0_i32 = arith.constant 0 : i32
    %c0_i32_0 = arith.constant 0 : i32
    return %arg0, %c0_i32 : i32, i32
  }
  func.func @transform_3(%arg0: i32, %arg1: i32) -> (i32, i32) {
    %c0_i32 = arith.constant 0 : i32
    %c0_i32_0 = arith.constant 0 : i32
    return %arg0, %c0_i32 : i32, i32
  }
}

</mosaic_0001>

<bundles_post_ra>
// kernel: tpu_custom_call.1
= control target key start
LH: loop header
LB: loop body
LE: loop exit
PB: predicated region body
PF: predicated region fallthrough
CT: control target
= control target key end

     0   :  { %9 = vsyncpa [#allocation5], 0  ;;  %s925_s0 = inlined_call_operand.vmem [shape: f32[30,32], index: 0, kind: input, shape index: {}]   ;;  %s926_s1 = inlined_call_operand.vmem [shape: s32[30,1], index: 1, kind: input, shape index: {}]   ;;  %s927_s2 = inlined_call_operand.hbm [shape: f32[16,128], index: 2, kind: output, shape index: {0}]   ;;  %s928_s3 = inlined_call_operand.hbm [shape: f32[16,128], index: 3, kind: output, shape index: {1}]  }
   0x1   :  { %11 = vsyncpa [#allocation5 + $0x1], 0 }
   0x2   :  { %12 = vsyncpa [#allocation7], 0 }
   0x3   :  { %14 = vsyncpa [#allocation7 + $0x1], 0  ;;  %s757_s12 = smov 0   ;;  %s759_s13 = smov 0  }
   0x4   :  { %s761_s14 = smov 0   ;;  %s763_s15 = smov 0  }
   0x5   :  { %s765_s16 = smov 0   ;;  %s767_s17 = smov 0  }
   0x6   :  { %s769_s18 = smov 0   ;;  %s771_s19 = smov 0  }
   0x7 LB: > { %s489_s20 = sadd.s32 4294967295, %s730_s19   ;;  %s490_s21 = sadd.s32 4294967294, %s730_s19   ;;  %s730_s19 = sphi %s771_s19, %s20_s19   ;;  %s726_s18 = sphi %s769_s18, %s939_s18   ;;  %s722_s17 = sphi %s767_s17, %s938_s17   ;;  %s718_s16 = sphi %s765_s16, %s937_s16   ;;  %s714_s15 = sphi %s763_s15, %s936_s15   ;;  %s710_s14 = sphi %s761_s14, %s935_s14   ;;  %s706_s13 = sphi %s759_s13, %s934_s13   ;;  %s702_s12 = sphi %s757_s12, %s933_s12  }
   0x8   : > { %s29_s22 = sadd.s32 1, %s722_s17  ;;  %s32_s23 = sadd.s32 1, %s726_s18 }
   0x9   : > { %p30_p0 = scmp.ge.s32.totalorder %s29_s22, 2  ;;  %p117_p1 = scmp.ne.s32.totalorder %s710_s14, %s706_s13 }
   0xa   : > { %p118_p2 = scmp.eq.s32.totalorder %s489_s20, 3  ;;  %p123_p4 = scmp.ne.s32.totalorder %s706_s13, %s702_s12 }
   0xb   : > { %s941_s22 = smov (%p30_p0, %s29_s22), 0  ;;  %s943_s23 = smov (!%p30_p0, %s32_s23), %s726_s18 }
   0xc   : > { %p806_p3 = por %p118_p2, %p117_p1  ;;  %p34_p5 = scmp.ge.s32.totalorder %s943_s23, 2 }
   0xd   : > { %p124_p6 = scmp.eq.s32.totalorder %s490_s21, 3  ;;  %p497_p7 = scmp.ge.s32.totalorder %s730_s19, 1 }
   0xe   : > { %p198_p8 = scmp.lt.s32.totalorder %s730_s19, 5  ;;  %s945_s23 = smov (%p34_p5, %s943_s23), 0 }
   0xf   : > { %p816_p9 = por %p124_p6, %p123_p4  ;;  %s104_s26 = ssub.s32 %s726_s18, %s945_s23 }
  0x10   : > { %p199_p10 = pnand %p497_p7, %p198_p8  ;;  %s107_s27 = sadd.s32 1, %s710_s14 }
  0x11   : > { %p105_p11 = scmp.eq.s32.totalorder %s104_s26, 0  ;;  %s827_s29 = sand.u32 (!%p199_p10), 1, %s706_s13  }
  0x12   : > { %202 = sbr.rel (%p199_p10) target bundleno = 610 (0x262), region = 28  ;;  %s500_s30 = sshll.u32 (!%p199_p10), %s718_s16, 1 }
  0x13   : > { %s824_s28 = scalar_select %p105_p11, %s710_s14, %s107_s27  }
  0x14   : > { %s498_s4 = sshll.u32 (!%p199_p10), %s827_s29, 3  ;;  %s832_s5 = sadd.s32 (!%p199_p10), %s714_s15, %s500_s30 }
  0x15   : > { %p240_p12 = scmp.lt.s32.totalorder (!%p199_p10), %s832_s5, 3  ;;  %s842_s26 = scalar_lea.vmem (!%p199_p10), [#allocation4], %s498_s4 }
  0x16   : > { %s844_s27 = scalar_lea.vmem (!%p199_p10), [#allocation6], %s498_s4  ;;  %p510_p13 = scmp.ne.s32.totalorder (!%p199_p10), %s714_s15, 0 }
  0x17   : > { %s241_s6 = scalar_select %p240_p12, %s832_s5, 3 }
  0x18   : > { %265 = sbr.rel (%p510_p13) target bundleno = 31 (0x1f), region = 32 }
  0x19   : > { %s947_s6 = smov (!%p240_p12, %s241_s6), 3 }
  0x1a   : > { %s504_s7 = sshll.u32 %s947_s6, 3 }
  0x1b   : > { %s245_s10 = scalar_lea.vmem %s925_s0, %s504_s7  ;;  %s257_s21 = scalar_lea.vmem %s926_s1, %s504_s7 }
  0x1d   : > { %vm266_vm0 = vcmask 7168   ;;  %v732_v0 = vmov 0.0  }
  0x1e   : > { %267 = vst.msk [vmem:[#allocation2] sm:$0xff] %vm266_vm0, %v732_v0  ;;  %268 = vst.msk [vmem:[#allocation3] sm:$0xff] %vm266_vm0, %v732_v0 }
  0x1f PF: > { %v269_v1 = vld [vmem:[%s245_s10] sm:$0xff]  ;;  %vm271_vm1 = vcmask 261120   ;;  %v733_v3 = vmov 0   ;;  %v281_v8 = vlaneseq  ;;  %s512_s30 = sshll.u32 %s832_s5, 3  ;;  %vm307_vm6 = vcmask 7168   ;;  %p513_p0 = scmp.ne.s32.totalorder %s714_s15, 1 }
  0x20   : > { %v272_v2 = vsel %vm271_vm1, %v269_v1, -inf  ;;  %603 = vset.pattern.permute.xlu0 %v733_v3  ;;  %v270_v4 = vld [vmem:[%s257_s21] sm:$0xff]  ;;  %v299_v16 = vstv %s512_s30  ;;  %v734_v19 = vmov 0.0  }
  0x21   : > { %273 = vmax.xlane.f32.xlu0 %v272_v2  ;;  %v282_v9 = vand.u32 127, %v281_v8  ;;  %v298_v15 = vshrl.u32 %v281_v8, 7  ;;  %vm302_vm3 = vcmp.ne.s32.totalorder %v270_v4, 4294967196 }
  0x23   : > { %v300_v17 = vadd.s32 %v299_v16, %v298_v15 }
  0x25   : > { %vm301_vm4 = vcmp.lt.s32.totalorder %v300_v17, 30  ;;  %v309_v18 = vld [vmem:[#allocation3] sm:$0xff]  ;;  %v304_v26 = vld [vmem:[#allocation2] sm:$0xff] }
  0x26   : > { %vm303_vm5 = vmand %vm301_vm4, %vm302_vm3 }
  0x27   : > { %v310_v20 = vsel %vm303_vm5, 1.0, %v734_v19 }
  0x28   : > { %v311_v21 = vadd.f32 %v310_v20, %v309_v18 }
  0x2a   : > { %312 = vst.msk [vmem:[#allocation3] sm:$0xff] %vm307_vm6, %v311_v21 }
  0x37   : > { %284 = vperm.xlu0 %603, %v270_v4  }
  0xaa   : > { %v274_v5 = vpop.xlane.xlu0 %273 }
  0xab   : > { %v275_v6 = vsub.f32 %v269_v1, %v274_v5 }
  0xad   : > { %v276_v7 = vmul.f32 1.442695, %v275_v6 }
  0xaf   : > { %604 = vpow2.f32 %v276_v7 }
  0xb2   : > { %v285_v10 = vpop.permute.xlu0 %284 }
  0xb3   : > { %vm286_vm2 = vcmp.eq.s32.totalorder %v282_v9, %v285_v10 }
  0xb4   : > { %v287_v13 = vsel %vm286_vm2, %v275_v6, 0.0 }
  0xb5   : > { %v288_v14 = vsel %vm271_vm1, %v287_v13, 0.0 }
  0xbc   : > { %v605_v11 = vpop.eup %604 }
  0xbd   : > { %v278_v12 = vsel %vm271_vm1, %v605_v11, 0.0 }
  0xbe   : > { %279 = vadd.xlane.f32.xlu1 %v278_v12 }
  0xc2   : > { %289 = vadd.xlane.f32.xlu1 %v288_v14 }
 0x147   : > { %v280_v22 = vpop.xlane.xlu1 %279 }
 0x148   : > { %606 = vlog2.f32 %v280_v22 }
 0x14b   : > { %v290_v25 = vpop.xlane.xlu1 %289 }
 0x155   : > { %v607_v23 = vpop.eup %606 }
 0x156   : > { %v292_v24 = vmul.f32 0.6931472, %v607_v23 }
 0x158   : > { %v293_v27 = vsub.f32 %v292_v24, %v290_v25 }
 0x159   : > { %316 = sbr.rel (%p513_p0) target bundleno = 564 (0x234), region = 36 }
 0x15a   : > { %v305_v28 = vsel %vm303_vm5, %v293_v27, 0.0 }
 0x15b   : > { %v306_v29 = vadd.f32 %v305_v28, %v304_v26 }
 0x15d   : > { %308 = vst.msk [vmem:[#allocation2] sm:$0xff] %vm307_vm6, %v306_v29 }
 0x15e   : > { %v330_v31 = vld [vmem:[#allocation3] sm:$0xff] }
 0x15f   : > { %v331_v33 = vsel %vm307_vm6, %v330_v31, 0.0 }
 0x164   : > { %v317_v30 = vld [vmem:[#allocation2] sm:$0xff] }
 0x165   : > { %v318_v32 = vsel %vm307_vm6, %v317_v30, 0.0 }
 0x166   : > { %319 = vadd.xlane.f32.xlu0 %v318_v32 }
 0x16a   : > { %332 = vadd.xlane.f32.xlu0 %v331_v33 }
 0x1ef   : > { %v320_v34 = vpop.xlane.xlu0 %319 }
 0x1f0   : > { %v321_v35 = vrot.slane %v320_v34, 4 }
 0x1f2   : > { %v322_v36 = vadd.f32 %v321_v35, %v320_v34 }
 0x1f3   : > { %v333_v37 = vpop.xlane.xlu0 %332 }
 0x1f4   : > { %v323_v38 = vrot.slane %v322_v36, 2  ;;  %v334_v39 = vrot.slane %v333_v37, 4 }
 0x1f6   : > { %v335_v40 = vadd.f32 %v334_v39, %v333_v37  ;;  %v324_v41 = vadd.f32 %v323_v38, %v322_v36 }
 0x1f8   : > { %v336_v42 = vrot.slane %v335_v40, 2  ;;  %v325_v43 = vrot.slane %v324_v41, 1 }
 0x1fa   : > { %v337_v44 = vadd.f32 %v336_v42, %v335_v40  ;;  %v326_v45 = vadd.f32 %v325_v43, %v324_v41 }
 0x1fc   : > { %520 = vpush %v326_v45  ;;  %v338_v46 = vrot.slane %v337_v44, 1 }
 0x1fe   : > { %v339_v47 = vadd.f32 %v338_v46, %v337_v44 }
 0x200   : > { %522 = vpush %v339_v47 }
 0x22d   : > { %s521_s15 = spop %520 }
 0x22e   : > { %v328_v48 = vstv %s521_s15 }
 0x22f   : > { %329 = vst [vmem:[%s842_s26] sm:$0xff] %v328_v48 }
 0x231   : > { %s523_s4 = spop %522 }
 0x232   : > { %v341_v49 = vstv %s523_s4 }
 0x233   : > { %342 = vst [vmem:[%s844_s27] sm:$0xff] %v341_v49 }
 0x234 PF: > { %s929_s5 = sshll.u32 %s718_s16, 7  ;;  %s362_s9 = sshll.u32 %s842_s26, 4  ;;  %s363_s9 = int_to_ptr.vmem [resolvable:$true] %s362_s9 }
 0x235   : > { %s360_s8 = scalar_lea.hbm %s927_s2, %s929_s5  ;;  %s344_s10 = scalar_lea.sflag [#allocation5], %s827_s29 }
 0x236   : > { %s608_s11 = scalar_lea.vmem %s363_s9, 128  ;;  %s735_s20 = smov [#allocation4]  }
 0x237   : > { %p609_p1 = scmp.ne.s32.totalorder %s363_s9, %s608_s11  ;;  %s612_s21 = sshll.u32 %s735_s20, 4  ;;  %s613_s21 = int_to_ptr.vmem [resolvable:$false] %s612_s21 }
 0x238   : > { %s614_s30 = scalar_lea.vmem %s613_s21, 256  ;;  %p615_p5 = scmp.lt.s32.totalorder %s363_s9, %s613_s21 }
 0x239   : > { %p610_p2 = pnand %p609_p1, %p806_p3  ;;  %p616_p6 = scmp.lt.s32.totalorder %s614_s30, %s608_s11 }
 0x23b   : > { %p611_p4 = pneg %p610_p2  ;;  %p617_p7 = por %p616_p6, %p615_p5 }
 0x23d   : > { %p618_p8 = pnand %p617_p7, %p611_p4 }
 0x23f   : > { %621 = shalt.err (!%p618_p8)
}
 0x240   : > { %s622_s15 = scalar_lea.hbm %s360_s8, 128  ;;  %s626_s6 = scalar_lea.hbm %s927_s2, 256 }
 0x241   : > { %p623_p10 = scmp.ne.s32.totalorder %s360_s8, %s622_s15  ;;  %p627_p13 = scmp.lt.s32.totalorder %s360_s8, %s927_s2 }
 0x242   : > { %p628_p0 = scmp.lt.s32.totalorder %s626_s6, %s622_s15 }
 0x243   : > { %p624_p11 = pnand %p623_p10, %p806_p3 }
 0x244   : > { %p629_p1 = por %p628_p0, %p627_p13 }
 0x245   : > { %p625_p12 = pneg %p624_p11 }
 0x247   : > { %p630_p2 = pnand %p629_p1, %p625_p12 }
 0x249   : > { %633 = shalt.err (!%p630_p2)
}
 0x24a   : > { %524 = dma.vmem_to_hbm [thread:$0]  (%p806_p3), %s363_s9, 128, %s360_s8, %s344_s10  }
 0x24b   : > { %s932_s11 = sshll.u32 %s718_s16, 7  ;;  %s375_s26 = sshll.u32 %s844_s27, 4  ;;  %s376_s26 = int_to_ptr.vmem [resolvable:$true] %s375_s26 }
 0x24c   : > { %s373_s30 = scalar_lea.hbm %s928_s3, %s932_s11  ;;  %s349_s5 = scalar_lea.sflag [#allocation7], %s827_s29 }
 0x24d   : > { %s634_s4 = scalar_lea.vmem %s376_s26, 128  ;;  %s736_s15 = smov [#allocation6]  }
 0x24e   : > { %p635_p4 = scmp.ne.s32.totalorder %s376_s26, %s634_s4  ;;  %s638_s6 = sshll.u32 %s736_s15, 4  ;;  %s639_s6 = int_to_ptr.vmem [resolvable:$false] %s638_s6 }
 0x24f   : > { %s640_s7 = scalar_lea.vmem %s639_s6, 256  ;;  %p641_p7 = scmp.lt.s32.totalorder %s376_s26, %s639_s6 }
 0x250   : > { %p636_p5 = pnand %p635_p4, %p806_p3  ;;  %p642_p8 = scmp.lt.s32.totalorder %s640_s7, %s634_s4 }
 0x252   : > { %p637_p6 = pneg %p636_p5  ;;  %p643_p10 = por %p642_p8, %p641_p7 }
 0x254   : > { %p644_p11 = pnand %p643_p10, %p637_p6 }
 0x256   : > { %647 = shalt.err (!%p644_p11)
}
 0x257   : > { %s648_s16 = scalar_lea.hbm %s373_s30, 128  ;;  %s652_s8 = scalar_lea.hbm %s928_s3, 256 }
 0x258   : > { %p649_p12 = scmp.ne.s32.totalorder %s373_s30, %s648_s16  ;;  %p653_p1 = scmp.lt.s32.totalorder %s373_s30, %s928_s3 }
 0x259   : > { %p654_p2 = scmp.lt.s32.totalorder %s652_s8, %s648_s16 }
 0x25a   : > { %p650_p13 = pnand %p649_p12, %p806_p3 }
 0x25b   : > { %p655_p4 = por %p654_p2, %p653_p1 }
 0x25c   : > { %p651_p0 = pneg %p650_p13 }
 0x25e   : > { %p656_p5 = pnand %p655_p4, %p651_p0 }
 0x260   : > { %659 = shalt.err (!%p656_p5)
}
 0x261   : > { %525 = dma.vmem_to_hbm [thread:$0]  (%p806_p3), %s376_s26, 128, %s373_s30, %s349_s5  }
 0x262 PF: > { %p535_p6 = scmp.ge.s32.totalorder %s730_s19, 2  ;;  %s387_s11 = sand.u32 1, %s702_s12  }
 0x263   : > { %s388_s20 = scalar_lea.sflag [#allocation5], %s387_s11 }
 0x264   : > { %p529_p7 = pnand %p535_p6, %p816_p9 }
 0x266   : > { %p530_p8 = pneg %p529_p7 }
 0x268   : > { %693 = dma.done.wait (%p530_p8), %s388_s20, 128  }
 0x269   : > { %695 = vsyncadd (%p530_p8), %s388_s20, 4294967168  ;;  %s397_s21 = scalar_lea.sflag [#allocation7], %s387_s11 }
 0x26a   : > { %697 = dma.done.wait (%p530_p8), %s397_s21, 128  }
 0x26b   : > { %699 = vsyncadd (%p530_p8), %s397_s21, 4294967168  ;;  %s20_s19 = sadd.s32 1, %s730_s19   ;;  %s933_s12 = smov %s706_s13 }
 0x26c   : > { %p17_p10 = scmp.ge.s32.totalorder %s20_s19, 6   ;;  %s934_s13 = smov %s710_s14 }
 0x26d   : > { %s935_s14 = smov %s824_s28  ;;  %s936_s15 = smov %s722_s17 }
 0x26e   : > { %s937_s16 = smov %s726_s18  ;;  %s938_s17 = smov %s941_s22 }
 0x26f   : > { %s939_s18 = smov %s945_s23  ;;  %19 = sbr.rel (!%p17_p10) target bundleno = 7 (0x7), region = 91 }
 0x274   :  { %402 = vsyncpa [#allocation5], 1 }
 0x275   :  { %404 = vsyncpa [#allocation5 + $0x1], 1 }
 0x276   :  { %405 = vsyncpa [#allocation7], 1 }
 0x277   :  { %407 = vsyncpa [#allocation7 + $0x1], 1 }

</bundles_post_ra>
